<compile_context>
chip_gen: v7x
topology: tpu7x:2x2x1
jax: 0.10.0
libtpu: 0.0.40
codegen_flags: <defaults>
</compile_context>

<pallas_src>
import functools

import jax
import jax.numpy as jnp
from jax import lax
from jax.experimental import pallas as pl
from jax.experimental.pallas import tpu as pltpu

# TODO(synk): DiceLoss source not provided; smoothing constant assumed 1e-5
# (MONAI default smooth_nr = smooth_dr = 1e-5).
_SMOOTH = 1e-5
_DEFAULT_BLOCK_BYTES = 8 * 1024 * 1024   # pred bytes streamed per grid step
_VMEM_LIMIT_BYTES = 48 * 1024 * 1024     # <= v7x's 64 MiB physical VMEM


def _spatial_layout(h, w):
    """Reshape the spatial extent to (rows, lanes) with a lane-dense last dim."""
    s = h * w
    if s % 128 == 0:
        return s // 128, 128              # lane-dense (free contiguous reshape)
    return h, w                           # fallback: keep original (H, W)


def _choose_row_tile(r, row_bytes, budget):
    """Rows of the reshaped spatial extent per block (prefers exact divisors)."""
    max_rows = max(1, budget // row_bytes)
    if r <= max_rows:
        return r, False                   # full spatial extent -> always legal
    best = 0
    t = 32                                # multiple of 32: legal for f32/bf16/int8
    while t <= max_rows:
        if r % t == 0:
            best = t
        t += 32
    if best:
        return best, False                # exact divisor: no tail mask anywhere
    tr = max(32, (max_rows // 32) * 32)
    if tr >= r:
        return r, False
    return tr, True                       # ragged tail: mask last row tile only


def _choose_batch_tile(n, block_bytes, budget, n_row_tiles):
    """Images folded per block (always an exact divisor of n)."""
    max_tb = max(1, budget // max(block_bytes, 1))
    if n_row_tiles == 1 and n >= 2:
        max_tb = min(max_tb, n // 2)      # keep >=2 grid steps for v7x megacore
    tb = 1
    for d in range(2, min(n, max_tb) + 1):
        if n % d == 0:
            tb = d
    return tb


def _dice_partial_kernel(pred_ref, y_ref, inter_ref, psum_ref, msum_ref,
                         *, r_total, tr, mask_rows):
    """Per grid step: emit lane-vector partial sums for this block.

    pred_ref : (TB, 3, TR, LW) float logits block
    y_ref    : (TB, TR, LW) integer label block (values in {0,1,2,3})
    inter_ref: (3, LW) per-class sum(p * mask)     for this block
    psum_ref : (3, LW) per-class sum(p)            for this block
    msum_ref : (3, LW) per-class sum(mask)         for this block
    """
    x = pred_ref[...].astype(jnp.float32)          # (TB, 3, TR, LW)
    # sigmoid(x) == 0.5 * (tanh(x/2) + 1): a single EUP op per element.
    p = 0.5 * jnp.tanh(0.5 * x) + 0.5

    yv = y_ref[...].astype(jnp.int32)              # (TB, TR, LW)
    e3 = yv == 3                                   # reused for tc and et
    mask3 = jnp.stack([yv > 0, (yv == 1) | e3, e3], axis=1)   # (TB, 3, TR, LW)

    def emit(valid):
        if valid is None:
            m3, pv = mask3, p
        else:
            v4 = valid[:, None, :, :]              # (TB, 1, TR, LW)
            m3 = mask3 & v4
            pv = jnp.where(v4, p, 0.0)             # keep NaN/garbage rows out
        # Intersection: mask already carries validity -> a single select.
        inter = jnp.where(m3, p, 0.0)
        inter_ref[...] = jnp.sum(inter, axis=(0, 2))                 # (3, LW)
        psum_ref[...] = jnp.sum(pv, axis=(0, 2))                     # (3, LW)
        msum_ref[...] = jnp.sum(m3.astype(jnp.float32), axis=(0, 2))  # (3, LW)

    if mask_rows:
        rb = pl.program_id(1)
        last = pl.num_programs(1) - 1

        @pl.when(rb == last)
        def _():
            rows = lax.broadcasted_iota(jnp.int32, yv.shape, 1)
            emit((rb * tr + rows) < r_total)

        @pl.when(rb != last)
        def _():
            emit(None)
    else:
        emit(None)


def dice_coeff(pred, y, smooth=_SMOOTH, max_block_bytes=_DEFAULT_BLOCK_BYTES):
    """pred: (N, 3, H, W) float logits; y: (N, 1, H, W) or (N, H, W) integer
    labels in {0..3}.  Returns (dice_wt, dice_tc, dice_et) scalars, matching
    DiceCoeff.forward."""
    n, c, h, w = pred.shape
    assert c == 3, "DiceCoeff expects 3 prediction channels (wt, tc, et)"
    assert y.size == n * h * w, "labels must be (N, 1, H, W) or (N, H, W)"

    r, lw = _spatial_layout(h, w)
    pred_r = pred.reshape(n, 3, r, lw)    # free: merging/splitting trailing dims
    y_r = y.reshape(n, r, lw)             # free; keeps narrow label dtype

    row_bytes = 3 * lw * pred.dtype.itemsize
    tr, mask_rows = _choose_row_tile(r, row_bytes, max_block_bytes)
    n_r = -(-r // tr)
    tb = _choose_batch_tile(n, tr * row_bytes, max_block_bytes, n_r)
    n_b = n // tb

    kernel = functools.partial(_dice_partial_kernel,
                               r_total=r, tr=tr, mask_rows=mask_rows)
    part_shape = jax.ShapeDtypeStruct((n_b, n_r, 3, lw), jnp.float32)
    part_spec = pl.BlockSpec((None, None, 3, lw), lambda i, j: (i, j, 0, 0))

    inter_p, psum_p, msum_p = pl.pallas_call(
        kernel,
        out_shape=(part_shape, part_shape, part_shape),
        grid_spec=pltpu.PrefetchScalarGridSpec(
            num_scalar_prefetch=0,
            grid=(n_b, n_r),
            in_specs=[
                # pred: TB images x 3 channels x (TR, LW) tile. No transpose,
                # no pad, no wrapper astype.
                pl.BlockSpec((tb, 3, tr, lw), lambda i, j: (i, 0, j, 0)),
                # labels stay in their narrow dtype.
                pl.BlockSpec((tb, tr, lw), lambda i, j: (i, j, 0)),
            ],
            out_specs=(part_spec, part_spec, part_spec),
        ),
        compiler_params=pltpu.CompilerParams(
            # Every grid step writes its own partial -> fully independent
            # steps; both axes parallel so v7x's two TensorCores share them.
            dimension_semantics=("parallel", "parallel"),
            vmem_limit_bytes=_VMEM_LIMIT_BYTES,
        ),
    )(pred_r, y_r)

    inter = jnp.sum(inter_p, axis=(0, 1, 3))       # (3,)
    psum = jnp.sum(psum_p, axis=(0, 1, 3))
    msum = jnp.sum(msum_p, axis=(0, 1, 3))
    dice = (2.0 * inter + smooth) / (psum + msum + smooth)
    return dice[0], dice[1], dice[2]


def _dice_coeff_ref(pred, y, smooth=_SMOOTH):
    """Pure-JAX reference matching the PyTorch forward."""
    p = jax.nn.sigmoid(pred.astype(jnp.float32))
    y_wt = (y > 0).astype(jnp.float32)
    y_tc = ((y == 1) | (y == 3)).astype(jnp.float32)
    y_et = (y == 3).astype(jnp.float32)
    outs = []
    for ci, mask in enumerate((y_wt, y_tc, y_et)):
        pc = p[:, ci:ci + 1]
        inter = jnp.sum(pc * mask)
        denom = jnp.sum(pc) + jnp.sum(mask)
        outs.append((2.0 * inter + smooth) / (denom + smooth))
    return tuple(outs)


if __name__ == "__main__":
    key = jax.random.PRNGKey(0)
    k1, k2, k3, k4, k5, k6 = jax.random.split(key, 6)

    def check(out, ref, rtol=1e-4):
        for a, b in zip(out, ref):
            assert jnp.allclose(a, b, atol=1e-5, rtol=rtol), (a, b)

    # Case 1: small NCHW f32 logits + int8 labels; lane-dense reshape,
    # full image per block (no masking path compiled).
    N, C, H, W = 2, 3, 16, 16
    pred1 = jax.random.normal(k1, (N, C, H, W), dtype=jnp.float32)
    y1 = jax.random.randint(k2, (N, 1, H, W), 0, 4, dtype=jnp.int32).astype(jnp.int8)
    out1 = dice_coeff(pred1, y1)
    jax.block_until_ready(out1)
    check(out1, _dice_coeff_ref(pred1, y1))

    # Case 2: tiny block budget forces row tiling with a ragged tail;
    # exercises the last-row-tile-only mask path (grid (2, 2), TR=32, tail=8).
    N2, H2, W2 = 2, 40, 128
    pred2 = jax.random.normal(k3, (N2, 3, H2, W2), dtype=jnp.float32)
    y2 = jax.random.randint(k4, (N2, 1, H2, W2), 0, 4, dtype=jnp.int32).astype(jnp.int8)
    out2 = dice_coeff(pred2, y2, max_block_bytes=48 * 1024)
    jax.block_until_ready(out2)
    check(out2, _dice_coeff_ref(pred2, y2))

    # Case 3: bf16 logits (halves HBM traffic on v5e/v6e), int32 labels,
    # H*W not a multiple of 128 (fallback layout) and batch folding (TB=2).
    N3, H3, W3 = 4, 24, 24
    pred3 = jax.random.normal(k5, (N3, 3, H3, W3), dtype=jnp.float32).astype(jnp.bfloat16)
    y3 = jax.random.randint(k6, (N3, 1, H3, W3), 0, 4, dtype=jnp.int32)
    out3 = dice_coeff(pred3, y3)
    jax.block_until_ready(out3)
    check(out3, _dice_coeff_ref(pred3, y3), rtol=2e-4)

    print("KERNEL_OK")
</pallas_src>

<mosaic_0001>
module attributes {stable_mosaic.version = 11 : i64} {
  func.func @_dice_partial_kernel(%arg0: i32, %arg1: i32, %arg2: memref<1x3x2x128xf32, #tpu.memory_space<vmem>>, %arg3: memref<1x2x128xi8, #tpu.memory_space<vmem>>, %arg4: memref<1x1x3x128xf32, #tpu.memory_space<vmem>>, %arg5: memref<1x1x3x128xf32, #tpu.memory_space<vmem>>, %arg6: memref<1x1x3x128xf32, #tpu.memory_space<vmem>>) attributes {dimension_semantics = [#tpu.dimension_semantics<parallel>, #tpu.dimension_semantics<parallel>], iteration_bounds = array<i64: 2, 1>, scalar_prefetch = 0 : i64, scratch_operands = 0 : i64, tpu.core_type = #tpu.core_type<tc>, window_params = [{transform_indices = @transform_0, window_bounds = array<i64: 1, 3, 2, 128>}, {transform_indices = @transform_1, window_bounds = array<i64: 1, 2, 128>}, {transform_indices = @transform_2, window_bounds = array<i64: 1, 1, 3, 128>}, {transform_indices = @transform_3, window_bounds = array<i64: 1, 1, 3, 128>}, {transform_indices = @transform_4, window_bounds = array<i64: 1, 1, 3, 128>}]} {
    %c0 = arith.constant 0 : index
    %c0_0 = arith.constant 0 : index
    %c0_1 = arith.constant 0 : index
    %c0_2 = arith.constant 0 : index
    %0 = vector.load %arg2[%c0, %c0_0, %c0_1, %c0_2] : memref<1x3x2x128xf32, #tpu.memory_space<vmem>>, vector<1x3x2x128xf32>
    %cst = arith.constant 5.000000e-01 : f32
    %1 = vector.broadcast %cst : f32 to vector<1x3x2x128xf32>
    %2 = arith.mulf %1, %0 : vector<1x3x2x128xf32>
    %3 = math.tanh %2 : vector<1x3x2x128xf32>
    %cst_3 = arith.constant 5.000000e-01 : f32
    %4 = vector.broadcast %cst_3 : f32 to vector<1x3x2x128xf32>
    %5 = arith.mulf %4, %3 : vector<1x3x2x128xf32>
    %cst_4 = arith.constant 5.000000e-01 : f32
    %6 = vector.broadcast %cst_4 : f32 to vector<1x3x2x128xf32>
    %7 = arith.addf %5, %6 : vector<1x3x2x128xf32>
    %c0_5 = arith.constant 0 : index
    %c0_6 = arith.constant 0 : index
    %c0_7 = arith.constant 0 : index
    %8 = vector.load %arg3[%c0_5, %c0_6, %c0_7] : memref<1x2x128xi8, #tpu.memory_space<vmem>>, vector<1x2x128xi8>
    %9 = arith.extsi %8 : vector<1x2x128xi8> to vector<1x2x128xi32>
    %c3_i32 = arith.constant 3 : i32
    %10 = vector.broadcast %c3_i32 : i32 to vector<1x2x128xi32>
    %11 = arith.cmpi eq, %9, %10 : vector<1x2x128xi32>
    %c0_i32 = arith.constant 0 : i32
    %12 = vector.broadcast %c0_i32 : i32 to vector<1x2x128xi32>
    %13 = arith.cmpi sgt, %9, %12 : vector<1x2x128xi32>
    %c1_i32 = arith.constant 1 : i32
    %14 = vector.broadcast %c1_i32 : i32 to vector<1x2x128xi32>
    %15 = arith.cmpi eq, %9, %14 : vector<1x2x128xi32>
    %16 = arith.ori %15, %11 : vector<1x2x128xi1>
    %17 = vector.shape_cast %13 : vector<1x2x128xi1> to vector<1x1x2x128xi1>
    %18 = vector.shape_cast %16 : vector<1x2x128xi1> to vector<1x1x2x128xi1>
    %19 = vector.shape_cast %11 : vector<1x2x128xi1> to vector<1x1x2x128xi1>
    %20 = tpu.concatenate %17, %18, %19 in 1 : vector<1x1x2x128xi1>, vector<1x1x2x128xi1>, vector<1x1x2x128xi1> -> vector<1x3x2x128xi1>
    %cst_8 = arith.constant 0.000000e+00 : f32
    %21 = vector.broadcast %cst_8 : f32 to vector<1x3x2x128xf32>
    %22 = arith.select %20, %7, %21 : vector<1x3x2x128xi1>, vector<1x3x2x128xf32>
    %cst_9 = arith.constant dense<0.000000e+00> : vector<3x128xf32>
    %23 = vector.multi_reduction <add>, %22, %cst_9 [0, 2] : vector<1x3x2x128xf32> to vector<3x128xf32>
    %c0_10 = arith.constant 0 : index
    %c0_11 = arith.constant 0 : index
    %c0_12 = arith.constant 0 : index
    %c0_13 = arith.constant 0 : index
    %24 = vector.load %arg4[%c0_10, %c0_11, %c0_12, %c0_13] : memref<1x1x3x128xf32, #tpu.memory_space<vmem>>, vector<1x1x3x128xf32>
    %25 = vector.shape_cast %24 : vector<1x1x3x128xf32> to vector<3x128xf32>
    %26 = vector.shape_cast %23 : vector<3x128xf32> to vector<1x1x3x128xf32>
    tpu.vector_store %arg4[%c0_10, %c0_11, %c0_12, %c0_13], %26 {strides = array<i32>} : memref<1x1x3x128xf32, #tpu.memory_space<vmem>>, vector<1x1x3x128xf32>,
    %cst_14 = arith.constant dense<0.000000e+00> : vector<3x128xf32>
    %27 = vector.multi_reduction <add>, %7, %cst_14 [0, 2] : vector<1x3x2x128xf32> to vector<3x128xf32>
    %c0_15 = arith.constant 0 : index
    %c0_16 = arith.constant 0 : index
    %c0_17 = arith.constant 0 : index
    %c0_18 = arith.constant 0 : index
    %28 = vector.load %arg5[%c0_15, %c0_16, %c0_17, %c0_18] : memref<1x1x3x128xf32, #tpu.memory_space<vmem>>, vector<1x1x3x128xf32>
    %29 = vector.shape_cast %28 : vector<1x1x3x128xf32> to vector<3x128xf32>
    %30 = vector.shape_cast %27 : vector<3x128xf32> to vector<1x1x3x128xf32>
    tpu.vector_store %arg5[%c0_15, %c0_16, %c0_17, %c0_18], %30 {strides = array<i32>} : memref<1x1x3x128xf32, #tpu.memory_space<vmem>>, vector<1x1x3x128xf32>,
    %31 = arith.extui %20 : vector<1x3x2x128xi1> to vector<1x3x2x128xi32>
    %32 = arith.sitofp %31 : vector<1x3x2x128xi32> to vector<1x3x2x128xf32>
    %cst_19 = arith.constant dense<0.000000e+00> : vector<3x128xf32>
    %33 = vector.multi_reduction <add>, %32, %cst_19 [0, 2] : vector<1x3x2x128xf32> to vector<3x128xf32>
    %c0_20 = arith.constant 0 : index
    %c0_21 = arith.constant 0 : index
    %c0_22 = arith.constant 0 : index
    %c0_23 = arith.constant 0 : index
    %34 = vector.load %arg6[%c0_20, %c0_21, %c0_22, %c0_23] : memref<1x1x3x128xf32, #tpu.memory_space<vmem>>, vector<1x1x3x128xf32>
    %35 = vector.shape_cast %34 : vector<1x1x3x128xf32> to vector<3x128xf32>
    %36 = vector.shape_cast %33 : vector<3x128xf32> to vector<1x1x3x128xf32>
    tpu.vector_store %arg6[%c0_20, %c0_21, %c0_22, %c0_23], %36 {strides = array<i32>} : memref<1x1x3x128xf32, #tpu.memory_space<vmem>>, vector<1x1x3x128xf32>,
    return
  }
  func.func @transform_0(%arg0: i32, %arg1: i32) -> (i32, i32, i32, i32) {
    %c0_i32 = arith.constant 0 : i32
    %c0_i32_0 = arith.constant 0 : i32
    %c0_i32_1 = arith.constant 0 : i32
    return %arg0, %c0_i32, %arg1, %c0_i32_0 : i32, i32, i32, i32
  }
  func.func @transform_1(%arg0: i32, %arg1: i32) -> (i32, i32, i32) {
    %c0_i32 = arith.constant 0 : i32
    %c0_i32_0 = arith.constant 0 : i32
    return %arg0, %arg1, %c0_i32 : i32, i32, i32
  }
  func.func @transform_2(%arg0: i32, %arg1: i32) -> (i32, i32, i32, i32) {
    %c0_i32 = arith.constant 0 : i32
    %c0_i32_0 = arith.constant 0 : i32
    %c0_i32_1 = arith.constant 0 : i32
    return %arg0, %arg1, %c0_i32, %c0_i32_0 : i32, i32, i32, i32
  }
  func.func @transform_3(%arg0: i32, %arg1: i32) -> (i32, i32, i32, i32) {
    %c0_i32 = arith.constant 0 : i32
    %c0_i32_0 = arith.constant 0 : i32
    %c0_i32_1 = arith.constant 0 : i32
    return %arg0, %arg1, %c0_i32, %c0_i32_0 : i32, i32, i32, i32
  }
  func.func @transform_4(%arg0: i32, %arg1: i32) -> (i32, i32, i32, i32) {
    %c0_i32 = arith.constant 0 : i32
    %c0_i32_0 = arith.constant 0 : i32
    %c0_i32_1 = arith.constant 0 : i32
    return %arg0, %arg1, %c0_i32, %c0_i32_0 : i32, i32, i32, i32
  }
}

</mosaic_0001>

<bundles_post_ra>
// kernel: tpu_custom_call.1
= control target key start
LH: loop header
LB: loop body
LE: loop exit
PB: predicated region body
PF: predicated region fallthrough
CT: control target
= control target key end

     0   :  { %10 = vsyncpa [#allocation3], 0  ;;  %s953_s0 = inlined_call_operand.hbm [shape: f32[2,3,2,128], index: 0, kind: input, shape index: {}]   ;;  %s954_s1 = inlined_call_operand.vmem [shape: s8[2,2,128], index: 1, kind: input, shape index: {}]   ;;  %s955_s2 = inlined_call_operand.vmem [shape: f32[2,1,3,128], index: 2, kind: output, shape index: {0}]   ;;  %s956_s3 = inlined_call_operand.vmem [shape: f32[2,1,3,128], index: 3, kind: output, shape index: {1}]   ;;  %s957_s4 = inlined_call_operand.vmem [shape: f32[2,1,3,128], index: 4, kind: output, shape index: {2}]  }
   0x1   :  { %12 = vsyncpa [#allocation3 + $0x1], 0  ;;  %s789_s15 = smov 0   ;;  %s791_s16 = smov 0  }
   0x2   :  { %s793_s17 = smov 0   ;;  %s795_s18 = smov 0  }
   0x3   :  { %s797_s19 = smov 0   ;;  %s799_s20 = smov 0  }
   0x4 LB: > { %s597_s21 = sadd.s32 4294967295, %s758_s20   ;;  %s30_s22 = sadd.s32 1, %s754_s19  ;;  %s758_s20 = sphi %s799_s20, %s18_s20   ;;  %s754_s19 = sphi %s797_s19, %s966_s19   ;;  %s750_s18 = sphi %s795_s18, %s965_s18   ;;  %s746_s17 = sphi %s793_s17, %s964_s17   ;;  %s742_s16 = sphi %s791_s16, %s963_s16   ;;  %s738_s15 = sphi %s789_s15, %s962_s15  }
   0x5   : > { %p32_p0 = scmp.ge.s32.totalorder %s30_s22, 2  ;;  %s39_s23 = sadd.s32 1, %s746_s17 }
   0x6   : > { %p46_p1 = scmp.ne.s32.totalorder %s746_s17, %s742_s16  ;;  %p47_p2 = scmp.eq.s32.totalorder %s758_s20, 0 }
   0x7   : > { %s968_s22 = smov (%p32_p0, %s30_s22), 0  ;;  %p52_p4 = scmp.ne.s32.totalorder %s742_s16, %s738_s15 }
   0x8   : > { %p48_p3 = por %p47_p2, %p46_p1  ;;  %s34_s24 = ssub.s32 %s754_s19, %s968_s22 }
   0x9   : > { %p53_p5 = scmp.eq.s32.totalorder %s597_s21, 0  ;;  %p37_p6 = scmp.eq.s32.totalorder %s34_s24, 0 }
   0xa   : > { %p620_p8 = scmp.lt.s32.totalorder %s758_s20, 2  ;;  %s188_s27 = sand.u32 1, %s746_s17  }
   0xb   : > { %p828_p7 = por %p53_p5, %p52_p4  ;;  %s612_s28 = smul.u32 96, %s754_s19 }
   0xc   : > { %s834_s26 = scalar_select %p37_p6, %s746_s17, %s39_s23  }
   0xd   : > { %s611_s29 = smul.u32 6, %s188_s27  ;;  %s841_s6 = scalar_lea.hbm %s953_s0, %s612_s28 }
   0xe   : > { %p843_p9 = pnand %p620_p8, %p48_p3  ;;  %s849_s10 = scalar_lea.sflag [#allocation3], %s188_s27 }
   0xf   : > { %s192_s8 = scalar_lea.vmem [#allocation2], %s611_s29  ;;  %s678_s11 = scalar_lea.hbm %s841_s6, 96 }
  0x10   : > { %s200_s9 = sshll.u32 %s192_s8, 4  ;;  %p679_p10 = scmp.ne.s32.totalorder %s841_s6, %s678_s11  ;;  %s847_s9 = int_to_ptr.vmem [resolvable:$true] %s200_s9 }
  0x11   : > { %p680_p11 = pneg %p843_p9  ;;  %s683_s14 = scalar_lea.hbm %s953_s0, 192 }
  0x12   : > { %p684_p0 = scmp.lt.u32.totalorder %s841_s6, %s953_s0  ;;  %p685_p1 = scmp.lt.u32.totalorder %s683_s14, %s678_s11 }
  0x13   : > { %p681_p12 = pnand %p680_p11, %p679_p10  ;;  %p687_p3 = scmp.lt.u32.totalorder %s678_s11, %s841_s6 }
  0x14   : > { %p686_p2 = por %p685_p1, %p684_p0 }
  0x15   : > { %p682_p13 = pneg %p681_p12 }
  0x16   : > { %p688_p4 = por %p687_p3, %p686_p2 }
  0x18   : > { %p689_p5 = pnand %p688_p4, %p682_p13 }
  0x1a   : > { %692 = shalt.err (!%p689_p5)
}
  0x1b   : > { %s693_s23 = scalar_lea.vmem %s847_s9, 96  ;;  %s760_s24 = smov [#allocation2]  }
  0x1c   : > { %p694_p6 = scmp.ne.s32.totalorder %s847_s9, %s693_s23  ;;  %s698_s27 = sshll.u32 %s760_s24, 4  ;;  %s699_s27 = int_to_ptr.vmem [resolvable:$false] %s698_s27 }
  0x1d   : > { %s700_s28 = scalar_lea.vmem %s699_s27, 192  ;;  %p701_p12 = scmp.lt.s32.totalorder %s847_s9, %s699_s27 }
  0x1e   : > { %p696_p8 = pnand %p694_p6, %p680_p11  ;;  %p702_p0 = scmp.lt.s32.totalorder %s700_s28, %s693_s23 }
  0x20   : > { %p697_p10 = pneg %p696_p8  ;;  %p703_p1 = por %p702_p0, %p701_p12 }
  0x22   : > { %p704_p2 = pnand %p703_p1, %p697_p10 }
  0x24   : > { %707 = shalt.err (!%p704_p2)
}
  0x25   : > { %s761_s29 = smov 32   ;;  %s762_s30 = smov 2  }
  0x26   : > { %619 = dma.hbm_to_vmem [thread:$0]  (!%p843_p9), %s841_s6, 96, %s847_s9, %s849_s10, %s761_s29, %s761_s29, %s762_s30  }
  0x27   : > { %p602_p11 = scmp.ge.s32.totalorder %s758_s20, 1  ;;  %p217_p13 = scmp.lt.s32.totalorder %s758_s20, 3 }
  0x29   : > { %p218_p3 = pnand %p602_p11, %p217_p13 }
  0x2a   : > { %s223_s5 = sand.u32 (!%p218_p3), 1, %s742_s16  }
  0x2b   : > { %221 = sbr.rel (%p218_p3) target bundleno = 89 (0x59), region = 28  ;;  %s224_s11 = scalar_lea.sflag (!%p218_p3), [#allocation3], %s223_s5 }
  0x2c   : > { %s613_s8 = smul.u32 (!%p218_p3), 6, %s223_s5 }
  0x2e   : > { %s227_s12 = scalar_lea.vmem (!%p218_p3), [#allocation2], %s613_s8 }
  0x32   : > { %733 = dma.done.wait (%p828_p7), %s224_s11, 96  }
  0x33   : > { %735 = vsyncadd (%p828_p7), %s224_s11, 4294967200  ;;  %p274_p4 = scmp.lt.s32.totalorder %s750_s18, 1  ;;  %v301_v0 = vld [vmem:[%s227_s12] sm:$0x3]  ;;  %v302_v1 = vld [vmem:[%s227_s12 + $0x2] sm:$0x3] }
  0x34   : > { %v303_v2 = vld [vmem:[%s227_s12 + $0x4] sm:$0x3]  ;;  %v304_v3 = vmul.f32 0.5, %v301_v0  ;;  %v305_v4 = vmul.f32 0.5, %v302_v1  ;;  %vm325_vm0 = vcmask 1041408   ;;  %v763_v9 = vmov 0.0  }
  0x35   : > { %s970_s18 = smov (!%p274_p4, %s750_s18), 1  ;;  %v306_v5 = vmul.f32 0.5, %v303_v2  ;;  %vm350_vm5 = vcmask 1041409   ;;  %vm352_vm6 = vcmask 1042434  }
  0x36   : > { %s279_s9 = scalar_lea.vmem %s954_s1, %s970_s18  ;;  %672 = vtanh.f32 %v304_v3  ;;  %s911_s25 = sshll.u32 %s970_s18, 2 }
  0x37   : > { %v316_v6 = vld [vmem:[%s279_s9] sm:$0x1]  ;;  %674 = vtanh.f32 %v305_v4  ;;  %s300_s13 = scalar_lea.vmem %s957_s4, %s911_s25  ;;  %s286_s21 = scalar_lea.vmem %s955_s2, %s911_s25 }
  0x38   : > { %v317_v7 = vunpack.c.0.s8 %v316_v6  ;;  %676 = vtanh.f32 %v306_v5  ;;  %s293_s27 = scalar_lea.vmem %s956_s3, %s911_s25 }
  0x3a   : > { %vm318_vm1 = vcmp.eq.s32.totalorder %v317_v7, 3  ;;  %vm319_vm2 = vcmp.gt.s32.totalorder %v317_v7, 0  ;;  %vm320_vm3 = vcmp.eq.s32.totalorder %v317_v7, 1 }
  0x3b   : > { %vm893_vm4 = vmor %vm320_vm3, %vm318_vm1  ;;  %v606_v10 = vsel %vm319_vm2, 1.0, %v763_v9  ;;  %v608_v11 = vsel %vm318_vm1, 1.0, %v763_v9 }
  0x3c   : > { %v607_v12 = vsel %vm893_vm4, 1.0, %v763_v9  ;;  %v390_v13 = vsel %vm325_vm0, %v606_v10, 0.0  ;;  %v404_v14 = vsel %vm325_vm0, %v608_v11, 0.0 }
  0x3d   : > { %v391_v15 = vrot.slane %v390_v13, 4  ;;  %v397_v16 = vsel %vm325_vm0, %v607_v12, 0.0  ;;  %v405_v17 = vrot.slane %v404_v14, 4 }
  0x3e   : > { %v398_v18 = vrot.slane %v397_v16, 4 }
  0x3f   : > { %v392_v19 = vadd.f32 %v391_v15, %v390_v13  ;;  %v406_v20 = vadd.f32 %v405_v17, %v404_v14 }
  0x40   : > { %v399_v21 = vadd.f32 %v398_v18, %v397_v16  ;;  %v673_v25 = vpop.eup %672 }
  0x41   : > { %v393_v22 = vrot.slane %v392_v19, 2  ;;  %v407_v23 = vrot.slane %v406_v20, 2  ;;  %v675_v28 = vpop.eup %674  ;;  %v310_v29 = vmul.f32 0.5, %v673_v25 }
  0x42   : > { %v400_v24 = vrot.slane %v399_v21, 2  ;;  %v677_v31 = vpop.eup %676  ;;  %v311_v32 = vmul.f32 0.5, %v675_v28 }
  0x43   : > { %v394_v26 = vadd.f32 %v393_v22, %v392_v19  ;;  %v408_v27 = vadd.f32 %v407_v23, %v406_v20  ;;  %v312_v35 = vmul.f32 0.5, %v677_v31  ;;  %v313_v36 = vadd.f32 0.5, %v310_v29 }
  0x44   : > { %v401_v30 = vadd.f32 %v400_v24, %v399_v21  ;;  %v314_v38 = vadd.f32 0.5, %v311_v32 }
  0x45   : > { %v395_v33 = vrot.slane %v394_v26, 1  ;;  %v409_v34 = vrot.slane %v408_v27, 1  ;;  %v315_v41 = vadd.f32 0.5, %v312_v35  ;;  %v322_v42 = vsel %vm319_vm2, %v313_v36, 0.0 }
  0x46   : > { %v402_v37 = vrot.slane %v401_v30, 1  ;;  %v356_v43 = vsel %vm325_vm0, %v313_v36, 0.0  ;;  %v323_v45 = vsel %vm893_vm4, %v314_v38, 0.0  ;;  %v326_v46 = vsel %vm325_vm0, %v322_v42, 0.0 }
  0x47   : > { %v396_v39 = vadd.f32 %v395_v33, %v394_v26  ;;  %v410_v40 = vadd.f32 %v409_v34, %v408_v27  ;;  %v357_v47 = vrot.slane %v356_v43, 4  ;;  %v363_v48 = vsel %vm325_vm0, %v314_v38, 0.0 }
  0x48   : > { %v403_v44 = vadd.f32 %v402_v37, %v401_v30  ;;  %v324_v49 = vsel %vm318_vm1, %v315_v41, 0.0  ;;  %v327_v50 = vrot.slane %v326_v46, 4  ;;  %v333_v51 = vsel %vm325_vm0, %v323_v45, 0.0 }
  0x49   : > { %v364_v52 = vrot.slane %v363_v48, 4  ;;  %v334_v53 = vrot.slane %v333_v51, 4  ;;  %v340_v54 = vsel %vm325_vm0, %v324_v49, 0.0  ;;  %v358_v55 = vadd.f32 %v357_v47, %v356_v43 }
  0x4a   : > { %v370_v56 = vsel %vm325_vm0, %v315_v41, 0.0  ;;  %v328_v57 = vadd.f32 %v327_v50, %v326_v46  ;;  %v341_v58 = vrot.slane %v340_v54, 4  ;;  %v414_v63 = vsel %vm350_vm5, %v403_v44, %v396_v39 }
  0x4b   : > { %v365_v59 = vadd.f32 %v364_v52, %v363_v48  ;;  %v371_v60 = vrot.slane %v370_v56, 4  ;;  %v335_v61 = vadd.f32 %v334_v53, %v333_v51  ;;  %v359_v62 = vrot.slane %v358_v55, 2 }
  0x4c   : > { %v329_v0 = vrot.slane %v328_v57, 2  ;;  %v342_v1 = vadd.f32 %v341_v58, %v340_v54  ;;  %v415_v6 = vsel %vm352_vm6, %v410_v40, %v414_v63 }
  0x4d   : > { %v366_v2 = vrot.slane %v365_v59, 2  ;;  %v372_v3 = vadd.f32 %v371_v60, %v370_v56  ;;  %v336_v4 = vrot.slane %v335_v61, 2  ;;  %v360_v5 = vadd.f32 %v359_v62, %v358_v55  ;;  %417 = vst [vmem:[%s300_s13] sm:$0x7] %v415_v6 }
  0x4e   : > { %v330_v7 = vadd.f32 %v329_v0, %v328_v57  ;;  %v343_v8 = vrot.slane %v342_v1, 2 }
  0x4f   : > { %v367_v9 = vadd.f32 %v366_v2, %v365_v59  ;;  %v373_v10 = vrot.slane %v372_v3, 2  ;;  %v337_v11 = vadd.f32 %v336_v4, %v335_v61  ;;  %v361_v12 = vrot.slane %v360_v5, 1 }
  0x50   : > { %v331_v13 = vrot.slane %v330_v7, 1  ;;  %v344_v14 = vadd.f32 %v343_v8, %v342_v1 }
  0x51   : > { %v368_v15 = vrot.slane %v367_v9, 1  ;;  %v374_v16 = vadd.f32 %v373_v10, %v372_v3  ;;  %v338_v17 = vrot.slane %v337_v11, 1  ;;  %v362_v18 = vadd.f32 %v361_v12, %v360_v5 }
  0x52   : > { %v332_v19 = vadd.f32 %v331_v13, %v330_v7  ;;  %v345_v20 = vrot.slane %v344_v14, 1 }
  0x53   : > { %v369_v21 = vadd.f32 %v368_v15, %v367_v9  ;;  %v375_v22 = vrot.slane %v374_v16, 1  ;;  %v339_v23 = vadd.f32 %v338_v17, %v337_v11 }
  0x54   : > { %v346_v24 = vadd.f32 %v345_v20, %v344_v14 }
  0x55   : > { %v376_v25 = vadd.f32 %v375_v22, %v374_v16  ;;  %v380_v26 = vsel %vm350_vm5, %v369_v21, %v362_v18  ;;  %v351_v27 = vsel %vm350_vm5, %v339_v23, %v332_v19 }
  0x56   : > { %v353_v28 = vsel %vm352_vm6, %v346_v24, %v351_v27 }
  0x57   : > { %v381_v29 = vsel %vm352_vm6, %v376_v25, %v380_v26  ;;  %355 = vst [vmem:[%s286_s21] sm:$0x7] %v353_v28 }
  0x58   : > { %383 = vst [vmem:[%s293_s27] sm:$0x7] %v381_v29 }
  0x59 PF: > { %s18_s20 = sadd.s32 1, %s758_s20   ;;  %s962_s15 = smov %s742_s16 }
  0x5a   : > { %p15_p7 = scmp.ge.s32.totalorder %s18_s20, 4   ;;  %s963_s16 = smov %s746_s17 }
  0x5b   : > { %s964_s17 = smov %s834_s26  ;;  %s965_s18 = smov %s754_s19 }
  0x5c   : > { %s966_s19 = smov %s968_s22  ;;  %17 = sbr.rel (!%p15_p7) target bundleno = 4 (0x4), region = 95 }
  0x63   :  { %483 = vsyncpa [#allocation3], 1 }
  0x64   :  { %485 = vsyncpa [#allocation3 + $0x1], 1 }

</bundles_post_ra>
